<compile_context>
chip_gen: v7x
topology: tpu7x:2x2x1
jax: 0.10.0
libtpu: 0.0.40
codegen_flags: <defaults>
</compile_context>

<pallas_src>
import jax
import jax.numpy as jnp
from jax.experimental import pallas as pl
from jax.experimental.pallas import tpu as pltpu

# Real (logical) sizes from the PyTorch module.
IN_F = 2
HID_F = 4
OUT_F = 1

_LANE = 128
_SUBLANE = 8
_DEFAULT_MAX_BLOCK_ROWS = 2048   # row-tiles (of 128 lanes) per grid block -> ~6 MiB dbl-buffered
_SMALL_BATCH_BYPASS = 1024       # B <= this: fused jnp expression instead of a kernel launch


def _round_up(n, m):
    return ((n + m - 1) // m) * m


def _xornet_kernel(w1_ref, b1_ref, w2_ref, b2_ref, x_ref, o_ref):
    # w1_ref: SMEM (IN_F*HID_F,) flat row-major (in, out): w1[i, j] == w1_ref[i*HID_F + j]
    # b1_ref: SMEM (HID_F,)
    # w2_ref: SMEM (HID_F,)      single output column of Linear(4, 1)
    # b2_ref: SMEM (OUT_F,)
    # x_ref : VMEM (IN_F, tr, 128)   x_ref[f, r, l] = feature f of batch row r*128 + l
    # o_ref : VMEM (tr, 128)         sigmoid output, batch tiled the same way
    x0 = x_ref[0]   # (tr, 128) -- full vreg tiles, every lane/sublane carries real work
    x1 = x_ref[1]   # (tr, 128)

    z = None
    for j in range(HID_F):  # fully unrolled: 4 hidden units, scalar weights from SMEM
        h_j = jnp.tanh(w1_ref[j] * x0 + w1_ref[HID_F + j] * x1 + b1_ref[j])
        t = w2_ref[j] * h_j
        z = t if z is None else z + t
    z = z + b2_ref[0]

    # Keep sigmoid as-is (EUP); do not rewrite as 1/(1+exp(-z)).
    o_ref[...] = jax.nn.sigmoid(z)


def pack_params(w1, b1, w2, b2):
    """Flatten the 17 real parameters into 1-D f32 arrays for SMEM. Call ONCE at init.

    Accepts w1 as (in, out) = (2, 4) or PyTorch (out, in) = (4, 2); likewise
    w2 as (4, 1) or (1, 4).  Shapes are validated (unambiguous since 2 != 4 != 1).
    """
    w1 = jnp.asarray(w1, jnp.float32)
    w2 = jnp.asarray(w2, jnp.float32)
    b1 = jnp.asarray(b1, jnp.float32).reshape(-1)
    b2 = jnp.asarray(b2, jnp.float32).reshape(-1)

    if w1.shape == (HID_F, IN_F):       # PyTorch (out, in) layout
        w1 = w1.T
    assert w1.shape == (IN_F, HID_F), f"w1 must be (2,4) or (4,2), got {w1.shape}"
    if w2.shape == (OUT_F, HID_F):      # PyTorch (out, in) layout
        w2 = w2.T
    assert w2.shape == (HID_F, OUT_F), f"w2 must be (4,1) or (1,4), got {w2.shape}"
    assert b1.shape == (HID_F,), f"b1 must have 4 elements, got {b1.shape}"
    assert b2.shape == (OUT_F,), f"b2 must have 1 element, got {b2.shape}"

    return (
        w1.reshape(IN_F * HID_F),   # row-major (in, out)
        b1,
        w2.reshape(HID_F),
        b2,
    )


def _choose_tiling(B, max_block_rows):
    """Pick (tr, Rp, n_blocks): tr row-tiles per block (multiple of 8), >= 2 blocks
    when possible (v7x megacore), last block not mostly padding."""
    R = pl.cdiv(B, _LANE)                       # 128-lane row-tiles needed
    n_blocks = max(2, pl.cdiv(R, max_block_rows))
    tr = _round_up(pl.cdiv(R, n_blocks), _SUBLANE)
    tr = min(tr, max(_round_up(R, _SUBLANE), _SUBLANE))
    n_blocks = pl.cdiv(R, tr)
    Rp = n_blocks * tr
    return tr, Rp, n_blocks


def _xornet_jnp(x, packed_params):
    """Small-batch bypass: fused jnp evaluation of the 17-parameter net."""
    w1f, b1f, w2f, b2f = packed_params
    w1 = w1f.reshape(IN_F, HID_F)
    w2 = w2f.reshape(HID_F, OUT_F)
    h = jnp.tanh(x.astype(jnp.float32) @ w1 + b1f)
    return jax.nn.sigmoid(h @ w2 + b2f)


def xornet_forward(x, packed_params, *, max_block_rows=_DEFAULT_MAX_BLOCK_ROWS,
                   use_pallas=None):
    """x: (B, 2) float32. packed_params: output of pack_params. Returns (B, 1).

    use_pallas: None = auto (bypass for B <= 1024), True/False = force.
    """
    w1f, b1f, w2f, b2f = packed_params
    B = x.shape[0]

    if use_pallas is None:
        use_pallas = B > _SMALL_BATCH_BYPASS
    if not use_pallas:
        return _xornet_jnp(x, packed_params)

    tr, Rp, n_blocks = _choose_tiling(B, max_block_rows)
    Bp = Rp * _LANE

    # (B, 2) -> (2, Rp, 128): 8 B/elem transpose+pad (no mostly-zero 8-sublane slab).
    # TODO(synk): for a final ~1.3x, pass x via memory_space=pl.ANY and deinterleave
    # per tile inside the kernel to skip this HBM round trip entirely.
    xt = (jnp.zeros((IN_F, Bp), jnp.float32)
          .at[:, :B].set(x.astype(jnp.float32).T)
          .reshape(IN_F, Rp, _LANE))

    smem = pltpu.MemorySpace.SMEM
    out_p = pl.pallas_call(
        _xornet_kernel,
        out_shape=jax.ShapeDtypeStruct((Rp, _LANE), jnp.float32),
        grid_spec=pltpu.PrefetchScalarGridSpec(
            num_scalar_prefetch=0,
            grid=(n_blocks,),
            in_specs=[
                pl.BlockSpec(memory_space=smem),                    # w1 flat (8,)
                pl.BlockSpec(memory_space=smem),                    # b1 (4,)
                pl.BlockSpec(memory_space=smem),                    # w2 (4,)
                pl.BlockSpec(memory_space=smem),                    # b2 (1,)
                pl.BlockSpec((IN_F, tr, _LANE), lambda i: (0, i, 0)),  # activations
            ],
            out_specs=pl.BlockSpec((tr, _LANE), lambda i: (i, 0)),
        ),
        compiler_params=pltpu.CompilerParams(
            # One batch grid axis, independent blocks -> megacore sharding on v7x.
            # Default tr=2048 => ~6 MiB double-buffered VMEM: fits v5e's 16 MiB
            # scoped default and v7x's 32 MiB without raising vmem_limit_bytes.
            dimension_semantics=("parallel",),
        ),
    )(w1f, b1f, w2f, b2f, xt)

    return out_p.reshape(Bp)[:B].reshape(B, OUT_F)


def _init_params(key):
    """Deterministic init mimicking PyTorch Linear default: U(-1/sqrt(fan_in), +)."""
    k1, k2, k3, k4 = jax.random.split(key, 4)
    bound1 = 1.0 / jnp.sqrt(IN_F)
    bound2 = 1.0 / jnp.sqrt(HID_F)
    w1 = jax.random.uniform(k1, (IN_F, HID_F), jnp.float32, -bound1, bound1)
    b1 = jax.random.uniform(k2, (HID_F,), jnp.float32, -bound1, bound1)
    w2 = jax.random.uniform(k3, (HID_F, OUT_F), jnp.float32, -bound2, bound2)
    b2 = jax.random.uniform(k4, (OUT_F,), jnp.float32, -bound2, bound2)
    return w1, b1, w2, b2


if __name__ == "__main__":
    key = jax.random.PRNGKey(0)
    pkey, xkey = jax.random.split(key)
    w1, b1, w2, b2 = _init_params(pkey)
    params = pack_params(w1, b1, w2, b2)  # done once, outside the per-call path

    def ref_fwd(xa):
        return jax.nn.sigmoid(jnp.tanh(xa @ w1 + b1) @ w2 + b2)

    # 1) Classic XOR input (batch of 4), forced through the Pallas kernel path.
    x = jnp.array([[0.0, 0.0], [0.0, 1.0], [1.0, 0.0], [1.0, 1.0]], jnp.float32)
    y = xornet_forward(x, params, use_pallas=True)
    jax.block_until_ready(y)
    assert y.shape == (4, 1)
    assert jnp.allclose(y, ref_fwd(x), atol=1e-5, rtol=1e-5)

    # 2) Small-batch bypass path (fused jnp, no kernel launch).
    x2 = jax.random.normal(xkey, (8, 2), jnp.float32)
    y2 = xornet_forward(x2, params)
    jax.block_until_ready(y2)
    assert jnp.allclose(y2, ref_fwd(x2), atol=1e-5, rtol=1e-5)

    # 3) Larger batch exercising the multi-block "parallel" grid
    #    (4000 rows -> 32 row-tiles -> 2 blocks of 16x128).
    x3 = jax.random.normal(jax.random.PRNGKey(1), (4000, 2), jnp.float32)
    y3 = xornet_forward(x3, params)
    jax.block_until_ready(y3)
    assert jnp.allclose(y3, ref_fwd(x3), atol=1e-5, rtol=1e-5)

    print("KERNEL_OK")
</pallas_src>

<mosaic_0001>
module attributes {stable_mosaic.version = 11 : i64} {
  func.func @_xornet_kernel(%arg0: i32, %arg1: memref<8xf32, #tpu.memory_space<smem>>, %arg2: memref<4xf32, #tpu.memory_space<smem>>, %arg3: memref<4xf32, #tpu.memory_space<smem>>, %arg4: memref<1xf32, #tpu.memory_space<smem>>, %arg5: memref<2x8x128xf32, #tpu.memory_space<vmem>>, %arg6: memref<8x128xf32, #tpu.memory_space<vmem>>) attributes {dimension_semantics = [#tpu.dimension_semantics<parallel>], iteration_bounds = array<i64: 1>, scalar_prefetch = 0 : i64, scratch_operands = 0 : i64, tpu.core_type = #tpu.core_type<tc>, window_params = [{transform_indices = @transform_0, window_bounds = array<i64: 8>}, {transform_indices = @transform_1, window_bounds = array<i64: 4>}, {transform_indices = @transform_2, window_bounds = array<i64: 4>}, {transform_indices = @transform_3, window_bounds = array<i64: 1>}, {transform_indices = @transform_4, window_bounds = array<i64: 2, 8, 128>}, {transform_indices = @transform_5, window_bounds = array<i64: 8, 128>}]} {
    %c0 = arith.constant 0 : index
    %c0_0 = arith.constant 0 : index
    %c0_1 = arith.constant 0 : index
    %0 = vector.load %arg5[%c0, %c0_0, %c0_1] : memref<2x8x128xf32, #tpu.memory_space<vmem>>, vector<1x8x128xf32>
    %1 = vector.shape_cast %0 : vector<1x8x128xf32> to vector<8x128xf32>
    %c1 = arith.constant 1 : index
    %c0_2 = arith.constant 0 : index
    %c0_3 = arith.constant 0 : index
    %2 = vector.load %arg5[%c1, %c0_2, %c0_3] : memref<2x8x128xf32, #tpu.memory_space<vmem>>, vector<1x8x128xf32>
    %3 = vector.shape_cast %2 : vector<1x8x128xf32> to vector<8x128xf32>
    %c0_4 = arith.constant 0 : index
    %4 = memref.load %arg1[%c0_4] : memref<8xf32, #tpu.memory_space<smem>>
    %5 = vector.broadcast %4 : f32 to vector<8x128xf32>
    %6 = arith.mulf %5, %1 : vector<8x128xf32>
    %c4 = arith.constant 4 : index
    %7 = memref.load %arg1[%c4] : memref<8xf32, #tpu.memory_space<smem>>
    %8 = vector.broadcast %7 : f32 to vector<8x128xf32>
    %9 = arith.mulf %8, %3 : vector<8x128xf32>
    %10 = arith.addf %6, %9 : vector<8x128xf32>
    %c0_5 = arith.constant 0 : index
    %11 = memref.load %arg2[%c0_5] : memref<4xf32, #tpu.memory_space<smem>>
    %12 = vector.broadcast %11 : f32 to vector<8x128xf32>
    %13 = arith.addf %10, %12 : vector<8x128xf32>
    %14 = math.tanh %13 : vector<8x128xf32>
    %c0_6 = arith.constant 0 : index
    %15 = memref.load %arg3[%c0_6] : memref<4xf32, #tpu.memory_space<smem>>
    %16 = vector.broadcast %15 : f32 to vector<8x128xf32>
    %17 = arith.mulf %16, %14 : vector<8x128xf32>
    %c1_7 = arith.constant 1 : index
    %18 = memref.load %arg1[%c1_7] : memref<8xf32, #tpu.memory_space<smem>>
    %19 = vector.broadcast %18 : f32 to vector<8x128xf32>
    %20 = arith.mulf %19, %1 : vector<8x128xf32>
    %c5 = arith.constant 5 : index
    %21 = memref.load %arg1[%c5] : memref<8xf32, #tpu.memory_space<smem>>
    %22 = vector.broadcast %21 : f32 to vector<8x128xf32>
    %23 = arith.mulf %22, %3 : vector<8x128xf32>
    %24 = arith.addf %20, %23 : vector<8x128xf32>
    %c1_8 = arith.constant 1 : index
    %25 = memref.load %arg2[%c1_8] : memref<4xf32, #tpu.memory_space<smem>>
    %26 = vector.broadcast %25 : f32 to vector<8x128xf32>
    %27 = arith.addf %24, %26 : vector<8x128xf32>
    %28 = math.tanh %27 : vector<8x128xf32>
    %c1_9 = arith.constant 1 : index
    %29 = memref.load %arg3[%c1_9] : memref<4xf32, #tpu.memory_space<smem>>
    %30 = vector.broadcast %29 : f32 to vector<8x128xf32>
    %31 = arith.mulf %30, %28 : vector<8x128xf32>
    %32 = arith.addf %17, %31 : vector<8x128xf32>
    %c2 = arith.constant 2 : index
    %33 = memref.load %arg1[%c2] : memref<8xf32, #tpu.memory_space<smem>>
    %34 = vector.broadcast %33 : f32 to vector<8x128xf32>
    %35 = arith.mulf %34, %1 : vector<8x128xf32>
    %c6 = arith.constant 6 : index
    %36 = memref.load %arg1[%c6] : memref<8xf32, #tpu.memory_space<smem>>
    %37 = vector.broadcast %36 : f32 to vector<8x128xf32>
    %38 = arith.mulf %37, %3 : vector<8x128xf32>
    %39 = arith.addf %35, %38 : vector<8x128xf32>
    %c2_10 = arith.constant 2 : index
    %40 = memref.load %arg2[%c2_10] : memref<4xf32, #tpu.memory_space<smem>>
    %41 = vector.broadcast %40 : f32 to vector<8x128xf32>
    %42 = arith.addf %39, %41 : vector<8x128xf32>
    %43 = math.tanh %42 : vector<8x128xf32>
    %c2_11 = arith.constant 2 : index
    %44 = memref.load %arg3[%c2_11] : memref<4xf32, #tpu.memory_space<smem>>
    %45 = vector.broadcast %44 : f32 to vector<8x128xf32>
    %46 = arith.mulf %45, %43 : vector<8x128xf32>
    %47 = arith.addf %32, %46 : vector<8x128xf32>
    %c3 = arith.constant 3 : index
    %48 = memref.load %arg1[%c3] : memref<8xf32, #tpu.memory_space<smem>>
    %49 = vector.broadcast %48 : f32 to vector<8x128xf32>
    %50 = arith.mulf %49, %1 : vector<8x128xf32>
    %c7 = arith.constant 7 : index
    %51 = memref.load %arg1[%c7] : memref<8xf32, #tpu.memory_space<smem>>
    %52 = vector.broadcast %51 : f32 to vector<8x128xf32>
    %53 = arith.mulf %52, %3 : vector<8x128xf32>
    %54 = arith.addf %50, %53 : vector<8x128xf32>
    %c3_12 = arith.constant 3 : index
    %55 = memref.load %arg2[%c3_12] : memref<4xf32, #tpu.memory_space<smem>>
    %56 = vector.broadcast %55 : f32 to vector<8x128xf32>
    %57 = arith.addf %54, %56 : vector<8x128xf32>
    %58 = math.tanh %57 : vector<8x128xf32>
    %c3_13 = arith.constant 3 : index
    %59 = memref.load %arg3[%c3_13] : memref<4xf32, #tpu.memory_space<smem>>
    %60 = vector.broadcast %59 : f32 to vector<8x128xf32>
    %61 = arith.mulf %60, %58 : vector<8x128xf32>
    %62 = arith.addf %47, %61 : vector<8x128xf32>
    %c0_14 = arith.constant 0 : index
    %63 = memref.load %arg4[%c0_14] : memref<1xf32, #tpu.memory_space<smem>>
    %64 = vector.broadcast %63 : f32 to vector<8x128xf32>
    %65 = arith.addf %62, %64 : vector<8x128xf32>
    %66 = arith.negf %65 : vector<8x128xf32>
    %67 = math.exp %66 : vector<8x128xf32>
    %cst = arith.constant 1.000000e+00 : f32
    %68 = vector.broadcast %cst : f32 to vector<8x128xf32>
    %69 = arith.addf %68, %67 : vector<8x128xf32>
    %70 = arith.divf %68, %69 : vector<8x128xf32>
    %c0_15 = arith.constant 0 : index
    %c0_16 = arith.constant 0 : index
    %71 = vector.load %arg6[%c0_15, %c0_16] : memref<8x128xf32, #tpu.memory_space<vmem>>, vector<8x128xf32>
    tpu.vector_store %arg6[%c0_15, %c0_16], %70 {strides = array<i32>} : memref<8x128xf32, #tpu.memory_space<vmem>>, vector<8x128xf32>,
    return
  }
  func.func @transform_0(%arg0: i32) -> i32 {
    %c0_i32 = arith.constant 0 : i32
    %c0_i32_0 = arith.constant 0 : i32
    return %c0_i32 : i32
  }
  func.func @transform_1(%arg0: i32) -> i32 {
    %c0_i32 = arith.constant 0 : i32
    %c0_i32_0 = arith.constant 0 : i32
    return %c0_i32 : i32
  }
  func.func @transform_2(%arg0: i32) -> i32 {
    %c0_i32 = arith.constant 0 : i32
    %c0_i32_0 = arith.constant 0 : i32
    return %c0_i32 : i32
  }
  func.func @transform_3(%arg0: i32) -> i32 {
    %c0_i32 = arith.constant 0 : i32
    %c0_i32_0 = arith.constant 0 : i32
    return %c0_i32 : i32
  }
  func.func @transform_4(%arg0: i32) -> (i32, i32, i32) {
    %c0_i32 = arith.constant 0 : i32
    %c0_i32_0 = arith.constant 0 : i32
    %c0_i32_1 = arith.constant 0 : i32
    return %c0_i32, %arg0, %c0_i32_0 : i32, i32, i32
  }
  func.func @transform_5(%arg0: i32) -> (i32, i32) {
    %c0_i32 = arith.constant 0 : i32
    %c0_i32_0 = arith.constant 0 : i32
    return %arg0, %c0_i32 : i32, i32
  }
}

</mosaic_0001>

<bundles_post_ra>
// kernel: tpu_custom_call.1
= control target key start
LH: loop header
LB: loop body
LE: loop exit
PB: predicated region body
PF: predicated region fallthrough
CT: control target
= control target key end

     0   :  { %11 = vsyncpa [#allocation6], 0  ;;  %s361_s0 = inlined_call_operand.vmem [shape: f32[8], index: 0, kind: input, shape index: {}]   ;;  %s362_s1 = inlined_call_operand.vmem [shape: f32[4], index: 1, kind: input, shape index: {}]   ;;  %s363_s2 = inlined_call_operand.vmem [shape: f32[4], index: 2, kind: input, shape index: {}]   ;;  %s364_s3 = inlined_call_operand.<no memory space> [shape: f32[1], index: 3, kind: input, shape index: {}]   ;;  %s365_s4 = inlined_call_operand.hbm [shape: f32[2,8,128], index: 4, kind: input, shape index: {}]   ;;  %s366_s5 = inlined_call_operand.hbm [shape: f32[8,128], index: 5, kind: output, shape index: {}]  }
   0x1   :  { %12 = vsyncpa [#allocation8], 0 }
   0x2   :  { %13 = vsyncpa [#allocation4], 0  ;;  %s31_s20 = sshll.u32 %s362_s1, 4  ;;  %s32_s20 = int_to_ptr.vmem [resolvable:$true] %s31_s20 }
   0x3   :  { %14 = vsyncpa [#allocation5], 0  ;;  %s21_s23 = sshll.u32 %s361_s0, 4  ;;  %s194_s24 = scalar_lea.vmem %s32_s20, 16  ;;  %s22_s23 = int_to_ptr.vmem [resolvable:$true] %s21_s23 }
   0x4   :  { %p195_p0 = scmp.ne.s32.totalorder %s32_s20, %s194_s24  ;;  %p199_p1 = scmp.lt.s32.totalorder %s32_s20, %s32_s20 }
   0x5   :  { %p200_p2 = scmp.lt.s32.totalorder %s194_s24, %s194_s24 }
   0x7   :  { %p201_p3 = por %p200_p2, %p199_p1 }
   0x9   :  { %p202_p4 = pnand %p201_p3, %p195_p0 }
   0xb   :  { %205 = shalt.err (!%p202_p4)
}
   0xc   :  { %s282_s25 = smov [#allocation7]   ;;  %s206_s26 = scalar_lea.vmem %s22_s23, 16 }
   0xd   :  { %34 = dma.vmem_to_smem %s32_s20, 16, %s282_s25, [#allocation8]  }
   0xe   :  { %p207_p5 = scmp.ne.s32.totalorder %s22_s23, %s206_s26  ;;  %p211_p6 = scmp.lt.s32.totalorder %s22_s23, %s22_s23 }
   0xf   :  { %p212_p7 = scmp.lt.s32.totalorder %s206_s26, %s206_s26 }
  0x11   :  { %p213_p8 = por %p212_p7, %p211_p6 }
  0x13   :  { %p214_p9 = pnand %p213_p8, %p207_p5 }
  0x15   :  { %217 = shalt.err (!%p214_p9)
}
  0x16   :  { %s283_s1 = smov [#allocation3]   ;;  %s41_s28 = sshll.u32 %s363_s2, 4  ;;  %s42_s28 = int_to_ptr.vmem [resolvable:$true] %s41_s28 }
  0x17   :  { %24 = dma.vmem_to_smem %s22_s23, 16, %s283_s1, [#allocation6]  }
  0x18   :  { %s218_s29 = scalar_lea.vmem %s42_s28, 16  ;;  %p223_p11 = scmp.lt.s32.totalorder %s42_s28, %s42_s28 }
  0x19   :  { %p219_p10 = scmp.ne.s32.totalorder %s42_s28, %s218_s29  ;;  %p224_p12 = scmp.lt.s32.totalorder %s218_s29, %s218_s29 }
  0x1b   :  { %p225_p13 = por %p224_p12, %p223_p11 }
  0x1d   :  { %p226_p0 = pnand %p225_p13, %p219_p10 }
  0x1f   :  { %229 = shalt.err (!%p226_p0)
}
  0x20   :  { %s284_s30 = smov [#allocation9]   ;;  %s285_s6 = smov [#allocation10]  }
  0x21   :  { %44 = dma.vmem_to_smem %s42_s28, 16, %s284_s30, [#allocation8]  }
  0x22   :  { %s52_s7 = sshll.u32 %s285_s6, 4  ;;  %s230_s10 = scalar_lea.hbm %s365_s4, 256  ;;  %s53_s7 = int_to_ptr.vmem [resolvable:$true] %s52_s7 }
  0x23   :  { %p231_p1 = scmp.ne.s32.totalorder %s365_s4, %s230_s10  ;;  %p234_p2 = scmp.lt.u32.totalorder %s230_s10, %s365_s4 }
  0x25   :  { %p236_p3 = pnand %p234_p2, %p231_p1 }
  0x27   :  { %239 = shalt.err (!%p236_p3)
}
  0x28   :  { %s240_s14 = scalar_lea.vmem %s53_s7, 256  ;;  %p245_p5 = scmp.lt.s32.totalorder %s53_s7, %s53_s7 }
  0x29   :  { %p241_p4 = scmp.ne.s32.totalorder %s53_s7, %s240_s14  ;;  %p246_p6 = scmp.lt.s32.totalorder %s240_s14, %s240_s14 }
  0x2b   :  { %p247_p7 = por %p246_p6, %p245_p5 }
  0x2d   :  { %p248_p8 = pnand %p247_p7, %p241_p4 }
  0x2f   :  { %251 = shalt.err (!%p248_p8)
}
  0x30   :  { %s286_s15 = smov 128   ;;  %s287_s16 = smov 8  }
  0x31   :  { %58 = dma.hbm_to_vmem [thread:$0]  %s365_s4, 256, %s53_s7, [#allocation4], %s286_s15, %s286_s15, %s287_s16  }
  0x32   :  { %274 = dma.done.wait [#allocation6], 16  }
  0x33   :  { %275 = vsyncadd [#allocation6], 4294967280 }
  0x34   :  { %276 = dma.done.wait [#allocation8], 32  }
  0x35   :  { %277 = vsyncadd [#allocation8], 4294967264 }
  0x36   :  { %278 = dma.done.wait [#allocation4], 256  }
  0x37   :  { %279 = vsyncadd [#allocation4], 4294967040 }
  0x38   :  { %71 = sfence }
  0x39   :  { %s75_s19 = sld [smem:[#allocation3]]  ;;  %s161_s20 = sld [smem:[#allocation3 + $0x4]]  ;;  %v72_v0 = vld [vmem:[#allocation10] sm:$0xff]  ;;  %v74_v1 = vld [vmem:[#allocation10 + $0x8] sm:$0xff]  ;;  %v135_v44 = vstv %s364_s3 }
  0x3a   :  { %s82_s21 = sld [smem:[#allocation7]]  ;;  %s162_s22 = sld [smem:[#allocation3 + $0x1]] }
  0x3b   :  { %s163_s23 = sld [smem:[#allocation3 + $0x5]]  ;;  %s340_s24 = sld [smem:[#allocation7 + $0x1]] }
  0x3c   :  { %s166_s25 = sld [smem:[#allocation3 + $0x2]]  ;;  %s167_s26 = sld [smem:[#allocation3 + $0x6]] }
  0x3d   :  { %s342_s4 = sld [smem:[#allocation7 + $0x2]]  ;;  %s170_s1 = sld [smem:[#allocation3 + $0x3]] }
  0x3e   :  { %s171_s0 = sld [smem:[#allocation3 + $0x7]]  ;;  %s172_s27 = sld [smem:[#allocation7 + $0x3]] }
  0x3f   :  { %v76_v2 = vstv %s75_s19  ;;  %v79_v3 = vstv %s161_s20  ;;  %s86_s28 = sld [smem:[#allocation9]]  ;;  %s165_s29 = sld [smem:[#allocation9 + $0x1]] }
  0x40   :  { %v77_v4 = vmul.f32 %v76_v2, %v72_v0  ;;  %v80_v5 = vmul.f32 %v79_v3, %v74_v1  ;;  %v83_v6 = vstv %s82_s21  ;;  %v90_v7 = vstv %s162_s22  ;;  %s169_s30 = sld [smem:[#allocation9 + $0x2]]  ;;  %s173_s6 = sld [smem:[#allocation9 + $0x3]] }
  0x41   :  { %v93_v8 = vstv %s163_s23  ;;  %v91_v10 = vmul.f32 %v90_v7, %v72_v0  ;;  %v97_v12 = vstv %s340_s24  ;;  %s288_s9 = smov [#allocation11]  }
  0x42   :  { %v81_v9 = vadd.f32 %v80_v5, %v77_v4  ;;  %v94_v11 = vmul.f32 %v93_v8, %v74_v1  ;;  %v105_v13 = vstv %s166_s25  ;;  %v108_v14 = vstv %s167_s26  ;;  %s150_s10 = sshll.u32 %s288_s9, 4  ;;  %s151_s10 = int_to_ptr.vmem [resolvable:$true] %s150_s10 }
  0x43   :  { %v106_v17 = vmul.f32 %v105_v13, %v72_v0  ;;  %v109_v18 = vmul.f32 %v108_v14, %v74_v1  ;;  %v112_v19 = vstv %s342_s4  ;;  %v120_v20 = vstv %s170_s1  ;;  %s252_s11 = scalar_lea.vmem %s151_s10, 128  ;;  %p257_p10 = scmp.lt.s32.totalorder %s151_s10, %s151_s10 }
  0x44   :  { %v84_v15 = vadd.f32 %v83_v6, %v81_v9  ;;  %v95_v16 = vadd.f32 %v94_v11, %v91_v10  ;;  %v123_v21 = vstv %s171_s0  ;;  %v121_v24 = vmul.f32 %v120_v20, %v72_v0  ;;  %p253_p9 = scmp.ne.s32.totalorder %s151_s10, %s252_s11  ;;  %p258_p11 = scmp.lt.s32.totalorder %s252_s11, %s252_s11 }
  0x45   :  { %v110_v23 = vadd.f32 %v109_v18, %v106_v17  ;;  %v124_v25 = vmul.f32 %v123_v21, %v74_v1  ;;  %v127_v27 = vstv %s172_s27  ;;  %v87_v30 = vstv %s86_s28 }
  0x46   :  { %182 = vtanh.f32 %v84_v15  ;;  %v98_v22 = vadd.f32 %v97_v12, %v95_v16  ;;  %v101_v32 = vstv %s165_s29  ;;  %v116_v35 = vstv %s169_s30  ;;  %p259_p12 = por %p258_p11, %p257_p10 }
  0x47   :  { %v113_v26 = vadd.f32 %v112_v19, %v110_v23  ;;  %v125_v28 = vadd.f32 %v124_v25, %v121_v24  ;;  %v131_v40 = vstv %s173_s6 }
  0x48   :  { %184 = vtanh.f32 %v98_v22  ;;  %p260_p13 = pnand %p259_p12, %p253_p9 }
  0x49   :  { %186 = vtanh.f32 %v113_v26  ;;  %v128_v29 = vadd.f32 %v127_v27, %v125_v28 }
  0x4b   :  { %188 = vtanh.f32 %v128_v29 }
  0x50   :  { %v183_v31 = vpop.eup %182 }
  0x51   :  { %v88_v33 = vmul.f32 %v183_v31, %v87_v30 }
  0x52   :  { %v185_v34 = vpop.eup %184 }
  0x53   :  { %v102_v36 = vmul.f32 %v185_v34, %v101_v32  ;;  %v187_v37 = vpop.eup %186 }
  0x54   :  { %v117_v39 = vmul.f32 %v187_v37, %v116_v35 }
  0x55   :  { %v103_v38 = vadd.f32 %v102_v36, %v88_v33  ;;  %v189_v41 = vpop.eup %188 }
  0x56   :  { %v132_v43 = vmul.f32 %v189_v41, %v131_v40 }
  0x57   :  { %v118_v42 = vadd.f32 %v117_v39, %v103_v38 }
  0x59   :  { %v133_v45 = vadd.f32 %v132_v43, %v118_v42 }
  0x5b   :  { %v136_v46 = vadd.f32 %v135_v44, %v133_v45 }
  0x5d   :  { %v174_v47 = vmul.f32 -1.442695, %v136_v46 }
  0x5f   :  { %190 = vpow2.f32 %v174_v47 }
  0x69   :  { %v191_v48 = vpop.eup %190 }
  0x6a   :  { %v140_v49 = vadd.f32 1.0, %v191_v48 }
  0x6c   :  { %192 = vrcp.f32 %v140_v49 }
  0x76   :  { %v193_v50 = vpop.eup %192 }
  0x77   :  { %143 = vst [vmem:[#allocation11] sm:$0xff] %v193_v50 }
  0x78   :  { %263 = shalt.err (!%p260_p13)
}
  0x79   :  { %s264_s2 = scalar_lea.hbm %s366_s5, 128 }
  0x7a   :  { %p265_p0 = scmp.ne.s32.totalorder %s366_s5, %s264_s2  ;;  %p268_p1 = scmp.lt.u32.totalorder %s264_s2, %s366_s5 }
  0x7c   :  { %p270_p2 = pnand %p268_p1, %p265_p0 }
  0x7e   :  { %273 = shalt.err (!%p270_p2)
}
  0x7f   :  { %153 = dma.vmem_to_hbm [thread:$0]  %s151_s10, 128, %s366_s5, [#allocation5]  }
  0x80   :  { %280 = dma.done.wait [#allocation5], 128  }
  0x81   :  { %281 = vsyncadd [#allocation5], 4294967168 }
  0x82   :  { %157 = vsyncpa [#allocation4], 1 }
  0x83   :  { %158 = vsyncpa [#allocation5], 1 }
  0x84   :  { %159 = vsyncpa [#allocation6], 1 }
  0x85   :  { %160 = vsyncpa [#allocation8], 1 }

</bundles_post_ra>
